<compile_context>
chip_gen: v7x
topology: tpu7x:2x2x1
jax: 0.10.0
libtpu: 0.0.40
codegen_flags: <defaults>
</compile_context>

<pallas_src>
import jax
import jax.numpy as jnp
from jax import lax
from jax.experimental import pallas as pl
from jax.experimental.pallas import tpu as pltpu


def _round_up(n, m):
    return ((n + m - 1) // m) * m


def mlp_kernel(x_ref, w1_ref, b1_ref, w2_ref, b2_ref, o_ref):
    # fc1 on the MXU with f32 accumulation:
    #   (50, 10) . (TB, 10)^T -> (50, TB)   (NT dot_general: contract the feature axis)
    # Batch rides the lane axis, so the intermediate and output are lane-dense while
    # the x DMA reads the native row-major (TB, 10) tile straight from HBM.
    h = lax.dot_general(
        w1_ref[...], x_ref[...],
        dimension_numbers=(((1,), (1,)), ((), ())),
        preferred_element_type=jnp.float32)
    # Bias + ReLU: the only VPU passes over the (50, TB) intermediate.
    h = jnp.maximum(h + b1_ref[...], 0.0)
    # fc2 (N=1) also on the MXU: (1, 50) @ (50, TB) -> (1, TB) lane-dense row.
    y = jnp.dot(w2_ref[...], h, preferred_element_type=jnp.float32)
    o_ref[...] = (y + b2_ref[0, 0]).astype(o_ref.dtype)


def simple_nn_forward(x, w1, b1, w2, b2, *, max_tile=16384):
    """x: (B,10) f32; PyTorch-layout params: w1 (50,10), b1 (50,), w2 (1,50), b2 (1,)."""
    B, in_f = x.shape
    hid = w1.shape[0]

    # Batch tile: multiple of 128 (lane width).  Large tiles amortize the ~0.35us
    # per-grid-step fixed cost; the 16K cap keeps (double-buffered x tile + (50,TB)
    # f32 intermediate) ~30 MiB, inside the 64 MiB v7x VMEM with headroom.
    bp_min = _round_up(max(B, 1), 128)
    TB = min(max_tile, bp_min)
    # If the whole batch would be one tile but there's enough work, split into two
    # tiles so both TensorCores of a v7x get a share (extra step is negligible).
    if bp_min <= max_tile and bp_min >= 2048:
        TB = _round_up((bp_min + 1) // 2, 128)
    Bp = _round_up(B, TB)
    grid = (Bp // TB,)

    x = x.astype(jnp.float32)
    # Tail-only padding; skipped entirely when B is already a multiple of TB.
    x_in = x if Bp == B else jnp.pad(x, ((0, Bp - B), (0, 0)))

    w1c = w1.astype(jnp.float32)                    # (50, 10)
    b1c = b1.reshape(hid, 1).astype(jnp.float32)    # (50, 1)  broadcasts over lanes
    w2c = w2.reshape(1, hid).astype(jnp.float32)    # (1, 50)
    b2s = b2.reshape(1, 1).astype(jnp.float32)      # (1, 1) scalar -> SMEM

    yt = pl.pallas_call(
        mlp_kernel,
        out_shape=jax.ShapeDtypeStruct((1, Bp), jnp.float32),
        grid_spec=pl.GridSpec(
            grid=grid,
            in_specs=[
                pl.BlockSpec((TB, in_f), lambda i: (i, 0)),         # x tile, native layout
                pl.BlockSpec((hid, in_f), lambda i: (0, 0)),        # w1 (VMEM-resident)
                pl.BlockSpec((hid, 1), lambda i: (0, 0)),           # b1 (VMEM-resident)
                pl.BlockSpec((1, hid), lambda i: (0, 0)),           # w2 (VMEM-resident)
                pl.BlockSpec(memory_space=pltpu.MemorySpace.SMEM),  # b2 scalar
            ],
            out_specs=pl.BlockSpec((1, TB), lambda i: (0, i)),      # y^T tile (lane-dense)
        ),
        compiler_params=pltpu.CompilerParams(
            dimension_semantics=("parallel",),
            vmem_limit_bytes=64 * 1024 * 1024,
        ),
        cost_estimate=pl.CostEstimate(
            flops=2 * Bp * (in_f * hid + hid),
            transcendentals=0,
            bytes_accessed=Bp * (in_f + 1) * 4 + (hid * in_f + 2 * hid + 1) * 4,
        ),
    )(x_in, w1c, b1c, w2c, b2s)

    # Padded tail columns carry junk (bias+ReLU of zero rows); slice them away.
    # When Bp == B the (1,B) -> (B,1) reshape is a free row-major relabel.
    return yt[0, :B].reshape(B, 1)


if __name__ == "__main__":
    key = jax.random.PRNGKey(0)
    kx, k1, k2, k3, k4 = jax.random.split(key, 5)
    batch = 8
    x = jax.random.normal(kx, (batch, 10), jnp.float32)

    # Deterministic init mimicking nn.Linear's uniform(-1/sqrt(fan_in), 1/sqrt(fan_in)),
    # kept in PyTorch layout: fc1.weight (50,10), fc1.bias (50,), fc2.weight (1,50), fc2.bias (1,).
    lim1 = 1.0 / jnp.sqrt(10.0)
    lim2 = 1.0 / jnp.sqrt(50.0)
    w1 = jax.random.uniform(k1, (50, 10), jnp.float32, -lim1, lim1)
    b1 = jax.random.uniform(k2, (50,), jnp.float32, -lim1, lim1)
    w2 = jax.random.uniform(k3, (1, 50), jnp.float32, -lim2, lim2)
    b2 = jax.random.uniform(k4, (1,), jnp.float32, -lim2, lim2)

    out = simple_nn_forward(x, w1, b1, w2, b2)
    jax.block_until_ready(out)
    assert out.shape == (batch, 1)

    # Exact f32 torch-equivalent reference; tolerance covers worst-case MXU f32
    # rounding mode (everything in the kernel stays f32 now).
    ref = jnp.maximum(x @ w1.T + b1, 0.0) @ w2.T + b2
    assert jnp.allclose(out, ref, atol=3e-2, rtol=3e-2), float(jnp.max(jnp.abs(out - ref)))

    print("KERNEL_OK")
</pallas_src>

<mosaic_0001>
module attributes {stable_mosaic.version = 11 : i64} {
  func.func @mlp_kernel(%arg0: i32, %arg1: memref<128x10xf32, #tpu.memory_space<vmem>>, %arg2: memref<50x10xf32, #tpu.memory_space<vmem>>, %arg3: memref<50x1xf32, #tpu.memory_space<vmem>>, %arg4: memref<1x50xf32, #tpu.memory_space<vmem>>, %arg5: memref<1x1xf32, #tpu.memory_space<smem>>, %arg6: memref<1x128xf32, #tpu.memory_space<vmem>>) attributes {dimension_semantics = [#tpu.dimension_semantics<parallel>], iteration_bounds = array<i64: 1>, scalar_prefetch = 0 : i64, scratch_operands = 0 : i64, tpu.core_type = #tpu.core_type<tc>, window_params = [{transform_indices = @transform_0, window_bounds = array<i64: 128, 10>}, {pipeline_mode = #tpu.pipeline_mode<synchronous>, transform_indices = @transform_1, window_bounds = array<i64: 50, 10>}, {pipeline_mode = #tpu.pipeline_mode<synchronous>, transform_indices = @transform_2, window_bounds = array<i64: 50, 1>}, {pipeline_mode = #tpu.pipeline_mode<synchronous>, transform_indices = @transform_3, window_bounds = array<i64: 1, 50>}, {transform_indices = @transform_4, window_bounds = array<i64: 1, 1>}, {transform_indices = @transform_5, window_bounds = array<i64: 1, 128>}]} {
    %c0 = arith.constant 0 : index
    %c0_0 = arith.constant 0 : index
    %0 = vector.load %arg2[%c0, %c0_0] : memref<50x10xf32, #tpu.memory_space<vmem>>, vector<50x10xf32>
    %c0_1 = arith.constant 0 : index
    %c0_2 = arith.constant 0 : index
    %1 = vector.load %arg1[%c0_1, %c0_2] : memref<128x10xf32, #tpu.memory_space<vmem>>, vector<128x10xf32>
    %cst = arith.constant dense<0.000000e+00> : vector<50x128xf32>
    %2 = tpu.matmul %0, %1, %cst {dimension_numbers = #tpu.dot_dimension_numbers<[1], [1], [0], [0], [0, 0, 1, 0], [], []>} : vector<50x10xf32>, vector<128x10xf32>, vector<50x128xf32> -> vector<50x128xf32>
    %c0_3 = arith.constant 0 : index
    %c0_4 = arith.constant 0 : index
    %3 = vector.load %arg3[%c0_3, %c0_4] : memref<50x1xf32, #tpu.memory_space<vmem>>, vector<50x1xf32>
    %4 = vector.broadcast %3 : vector<50x1xf32> to vector<50x128xf32>
    %5 = arith.addf %2, %4 : vector<50x128xf32>
    %cst_5 = arith.constant 0.000000e+00 : f32
    %6 = vector.broadcast %cst_5 : f32 to vector<50x128xf32>
    %7 = arith.maximumf %5, %6 : vector<50x128xf32>
    %c0_6 = arith.constant 0 : index
    %c0_7 = arith.constant 0 : index
    %8 = vector.load %arg4[%c0_6, %c0_7] : memref<1x50xf32, #tpu.memory_space<vmem>>, vector<1x50xf32>
    %cst_8 = arith.constant dense<0.000000e+00> : vector<1x128xf32>
    %9 = tpu.matmul %8, %7, %cst_8 {dimension_numbers = #tpu.dot_dimension_numbers<[1], [0], [0], [1], [0, 0, 1, 1], [], []>} : vector<1x50xf32>, vector<50x128xf32>, vector<1x128xf32> -> vector<1x128xf32>
    %c0_9 = arith.constant 0 : index
    %c0_10 = arith.constant 0 : index
    %10 = memref.load %arg5[%c0_9, %c0_10] : memref<1x1xf32, #tpu.memory_space<smem>>
    %11 = vector.broadcast %10 : f32 to vector<1x128xf32>
    %12 = arith.addf %9, %11 : vector<1x128xf32>
    %c0_11 = arith.constant 0 : index
    %c0_12 = arith.constant 0 : index
    %13 = vector.load %arg6[%c0_11, %c0_12] : memref<1x128xf32, #tpu.memory_space<vmem>>, vector<1x128xf32>
    tpu.vector_store %arg6[%c0_11, %c0_12], %12 {strides = array<i32>} : memref<1x128xf32, #tpu.memory_space<vmem>>, vector<1x128xf32>,
    return
  }
  func.func @transform_0(%arg0: i32) -> (i32, i32) {
    %c0_i32 = arith.constant 0 : i32
    %c0_i32_0 = arith.constant 0 : i32
    return %arg0, %c0_i32 : i32, i32
  }
  func.func @transform_1(%arg0: i32) -> (i32, i32) {
    %c0_i32 = arith.constant 0 : i32
    %c0_i32_0 = arith.constant 0 : i32
    %c0_i32_1 = arith.constant 0 : i32
    return %c0_i32, %c0_i32_0 : i32, i32
  }
  func.func @transform_2(%arg0: i32) -> (i32, i32) {
    %c0_i32 = arith.constant 0 : i32
    %c0_i32_0 = arith.constant 0 : i32
    %c0_i32_1 = arith.constant 0 : i32
    return %c0_i32, %c0_i32_0 : i32, i32
  }
  func.func @transform_3(%arg0: i32) -> (i32, i32) {
    %c0_i32 = arith.constant 0 : i32
    %c0_i32_0 = arith.constant 0 : i32
    %c0_i32_1 = arith.constant 0 : i32
    return %c0_i32, %c0_i32_0 : i32, i32
  }
  func.func @transform_4(%arg0: i32) -> (i32, i32) {
    %c0_i32 = arith.constant 0 : i32
    %c0_i32_0 = arith.constant 0 : i32
    %c0_i32_1 = arith.constant 0 : i32
    return %c0_i32, %c0_i32_0 : i32, i32
  }
  func.func @transform_5(%arg0: i32) -> (i32, i32) {
    %c0_i32 = arith.constant 0 : i32
    %c0_i32_0 = arith.constant 0 : i32
    return %c0_i32, %arg0 : i32, i32
  }
}

</mosaic_0001>

<bundles_post_ra>
// kernel: tpu_custom_call.1
= control target key start
LH: loop header
LB: loop body
LE: loop exit
PB: predicated region body
PF: predicated region fallthrough
CT: control target
= control target key end

     0   :  { %11 = vsyncpa [#allocation4], 0  ;;  %s891_s0 = inlined_call_operand.hbm [shape: f32[128,10], index: 0, kind: input, shape index: {}]   ;;  %s892_s1 = inlined_call_operand.hbm [shape: f32[50,10], index: 1, kind: input, shape index: {}]   ;;  %s893_s2 = inlined_call_operand.hbm [shape: f32[50,1], index: 2, kind: input, shape index: {}]   ;;  %s894_s3 = inlined_call_operand.hbm [shape: f32[1,50], index: 3, kind: input, shape index: {}]   ;;  %s895_s4 = inlined_call_operand.<no memory space> [shape: f32[1,1], index: 4, kind: input, shape index: {}]   ;;  %s896_s5 = inlined_call_operand.hbm [shape: f32[1,128], index: 5, kind: output, shape index: {}]  }
   0x1   :  { %12 = vsyncpa [#allocation7], 0 }
   0x2   :  { %13 = vsyncpa [#allocation10], 0 }
   0x3   :  { %14 = vsyncpa [#allocation5], 0  ;;  %s714_s18 = smov [#allocation6]   ;;  %s715_s20 = smov [#allocation3]  }
   0x4   :  { %s32_s19 = sshll.u32 %s714_s18, 4  ;;  %s20_s21 = sshll.u32 %s715_s20, 4  ;;  %s33_s19 = int_to_ptr.vmem [resolvable:$true] %s32_s19  ;;  %s755_s21 = int_to_ptr.vmem [resolvable:$true] %s20_s21 }
   0x5   :  { %s596_s24 = scalar_lea.hbm %s892_s1, 896 }
   0x6   :  { %p597_p0 = scmp.ne.s32.totalorder %s892_s1, %s596_s24  ;;  %p600_p1 = scmp.lt.u32.totalorder %s596_s24, %s892_s1 }
   0x8   :  { %p602_p2 = pnand %p600_p1, %p597_p0 }
   0xa   :  { %605 = shalt.err (!%p602_p2)
}
   0xb   :  { %s606_s29 = scalar_lea.vmem %s33_s19, 896  ;;  %p611_p4 = scmp.lt.s32.totalorder %s33_s19, %s33_s19 }
   0xc   :  { %p607_p3 = scmp.ne.s32.totalorder %s33_s19, %s606_s29  ;;  %p612_p5 = scmp.lt.s32.totalorder %s606_s29, %s606_s29 }
   0xe   :  { %p613_p6 = por %p612_p5, %p611_p4 }
  0x10   :  { %p614_p7 = pnand %p613_p6, %p607_p3 }
  0x12   :  { %617 = shalt.err (!%p614_p7)
}
  0x13   :  { %s716_s30 = smov 128   ;;  %s717_s6 = smov 8  }
  0x14   :  { %38 = dma.hbm_to_vmem [thread:$0]  %s892_s1, 896, %s33_s19, [#allocation7], %s716_s30, %s716_s30, %s717_s6  }
  0x15   :  { %s618_s11 = scalar_lea.hbm %s891_s0, 2048 }
  0x16   :  { %p619_p8 = scmp.ne.s32.totalorder %s891_s0, %s618_s11  ;;  %p622_p9 = scmp.lt.u32.totalorder %s618_s11, %s891_s0 }
  0x18   :  { %p624_p10 = pnand %p622_p9, %p619_p8 }
  0x1a   :  { %627 = shalt.err (!%p624_p10)
}
  0x1b   :  { %s628_s16 = scalar_lea.vmem %s755_s21, 2048  ;;  %p633_p12 = scmp.lt.s32.totalorder %s755_s21, %s755_s21 }
  0x1c   :  { %p629_p11 = scmp.ne.s32.totalorder %s755_s21, %s628_s16  ;;  %p634_p13 = scmp.lt.s32.totalorder %s628_s16, %s628_s16 }
  0x1e   :  { %p635_p0 = por %p634_p13, %p633_p12 }
  0x20   :  { %p636_p1 = pnand %p635_p0, %p629_p11 }
  0x22   :  { %639 = shalt.err (!%p636_p1)
}
  0x23   :  { %26 = dma.hbm_to_vmem [thread:$0]  %s891_s0, 2048, %s755_s21, [#allocation4], %s716_s30, %s716_s30, %s717_s6  }
  0x24   :  { %s718_s18 = smov [#allocation8]   ;;  %s719_s20 = smov [#allocation9]  }
  0x25   :  { %s44_s19 = sshll.u32 %s718_s18, 4  ;;  %s57_s22 = sshll.u32 %s719_s20, 4  ;;  %s45_s19 = int_to_ptr.vmem [resolvable:$true] %s44_s19  ;;  %s58_s22 = int_to_ptr.vmem [resolvable:$true] %s57_s22 }
  0x26   :  { %s640_s25 = scalar_lea.hbm %s893_s2, 896 }
  0x27   :  { %p641_p2 = scmp.ne.s32.totalorder %s893_s2, %s640_s25  ;;  %p644_p3 = scmp.lt.u32.totalorder %s640_s25, %s893_s2 }
  0x29   :  { %p646_p4 = pnand %p644_p3, %p641_p2 }
  0x2b   :  { %649 = shalt.err (!%p646_p4)
}
  0x2c   :  { %s650_s0 = scalar_lea.vmem %s45_s19, 896  ;;  %p655_p6 = scmp.lt.s32.totalorder %s45_s19, %s45_s19 }
  0x2d   :  { %p651_p5 = scmp.ne.s32.totalorder %s45_s19, %s650_s0  ;;  %p656_p7 = scmp.lt.s32.totalorder %s650_s0, %s650_s0 }
  0x2f   :  { %p657_p8 = por %p656_p7, %p655_p6 }
  0x31   :  { %p658_p9 = pnand %p657_p8, %p651_p5 }
  0x33   :  { %661 = shalt.err (!%p658_p9)
}
  0x34   :  { %50 = dma.hbm_to_vmem [thread:$0]  %s893_s2, 896, %s45_s19, [#allocation7], %s716_s30, %s716_s30, %s717_s6  }
  0x35   :  { %s662_s10 = scalar_lea.hbm %s894_s3, 16 }
  0x36   :  { %p663_p10 = scmp.ne.s32.totalorder %s894_s3, %s662_s10  ;;  %p666_p11 = scmp.lt.u32.totalorder %s662_s10, %s894_s3 }
  0x38   :  { %p668_p12 = pnand %p666_p11, %p663_p10 }
  0x3a   :  { %671 = shalt.err (!%p668_p12)
}
  0x3b   :  { %s672_s15 = scalar_lea.vmem %s58_s22, 16  ;;  %s676_s16 = scalar_lea.vmem %s58_s22, 32 }
  0x3c   :  { %p673_p13 = scmp.ne.s32.totalorder %s58_s22, %s672_s15  ;;  %p677_p0 = scmp.lt.s32.totalorder %s58_s22, %s58_s22 }
  0x3d   :  { %p678_p1 = scmp.lt.s32.totalorder %s676_s16, %s672_s15 }
  0x3f   :  { %p679_p2 = por %p678_p1, %p677_p0 }
  0x41   :  { %p680_p3 = pnand %p679_p2, %p673_p13 }
  0x43   :  { %683 = shalt.err (!%p680_p3)
}
  0x44   :  { %60 = dma.hbm_to_vmem [thread:$0]  %s894_s3, 16, %s58_s22, [#allocation10]  }
  0x45   :  { %706 = dma.done.wait [#allocation4], 2048  }
  0x46   :  { %707 = vsyncadd [#allocation4], 4294965248 }
  0x47   :  { %708 = dma.done.wait [#allocation7], 1792  }
  0x48   :  { %709 = vsyncadd [#allocation7], 4294965504 }
  0x49   :  { %710 = dma.done.wait [#allocation10], 16  }
  0x4a   :  { %711 = vsyncadd [#allocation10], 4294967280  ;;  %v720_v0 = vmov 0.0|0.0   ;;  %vm721_vm0 = vmmov 0   ;;  %v722_v1 = vmov 0.0   ;;  %v723_v2 = vmov 0  }
  0x4b   :  { %542 = vmatprep.subr.bf16.mxu0 %v720_v0  ;;  %504 = vmatprep.mubr.msk.f32.mxu0 %vm721_vm0, %v722_v1  ;;  %vm140_vm1 = vcmask 80896   ;;  %v82_v3 = vld [vmem:[#allocation3] sm:$0xff]  ;;  %v83_v4 = vld [vmem:[#allocation3 + $0x8] sm:$0xff]  ;;  %v84_v7 = vld [vmem:[#allocation3 + $0x10] sm:$0xff]  ;;  %vm324_vm3 = vcmask 1041408   ;;  %vm320_vm4 = vcmask 408576  }
  0x4c   :  { %594 = vset.pattern.permute.xlu0 %v723_v2  ;;  %595 = vset.pattern.permute.xlu1 %v723_v2  ;;  %vm827_vm2 = vmpackc.low %vm140_vm1, %vm140_vm1  ;;  %v543_v6 = vpack.c.bf16 %v83_v4, %v82_v3  ;;  %v85_v8 = vld [vmem:[#allocation3 + $0x18] sm:$0xff]  ;;  %v100_v11 = vld [vmem:[#allocation8 + $0x10] sm:$0xff]  ;;  %s724_s1 = smov [#allocation11]  }
  0x4d   :  { %574 = vmatprep.subr.bf16.mxu1 %v720_v0  ;;  %539 = vmatprep.mubr.msk.f32.mxu1 %vm721_vm0, %v722_v1  ;;  %v547_v9 = vpack.c.bf16 %v85_v8, %v84_v7  ;;  %v98_v10 = vld [vmem:[#allocation8] sm:$0xff]  ;;  %v99_v12 = vld [vmem:[#allocation8 + $0x8] sm:$0xff]  ;;  %v101_v13 = vld [vmem:[#allocation8 + $0x18] sm:$0xff]  ;;  %s405_s17 = sshll.u32 %s724_s1, 4  ;;  %s406_s17 = int_to_ptr.vmem [resolvable:$true] %s405_s17 }
  0x4e   :  { %545 = vmatpush3.bf16.xpose.msk.msra.mxu0 %vm827_vm2, %v543_v6  ;;  %107 = vperm.xlu0 %594, %v98_v10   ;;  %v86_v14 = vld [vmem:[#allocation3 + $0x20] sm:$0xff]  ;;  %v87_v15 = vld [vmem:[#allocation3 + $0x28] sm:$0xff]  ;;  %v102_v16 = vld [vmem:[#allocation8 + $0x20] sm:$0xff]  ;;  %s684_s18 = scalar_lea.vmem %s406_s17, 16  ;;  %s688_s19 = scalar_lea.vmem %s406_s17, 32 }
  0x4f   :  { %546 = vmatprep.subr.bf16.mxu0 %v720_v0  ;;  %117 = vperm.xlu1 %595, %v100_v11   ;;  %v103_v17 = vld [vmem:[#allocation8 + $0x28] sm:$0xff]  ;;  %v551_v18 = vpack.c.bf16 %v87_v15, %v86_v14  ;;  %v104_v19 = vld [vmem:[#allocation8 + $0x30] sm:$0x3]  ;;  %v88_v20 = vld [vmem:[#allocation3 + $0x30] sm:$0xff]  ;;  %p685_p4 = scmp.ne.s32.totalorder %s406_s17, %s684_s18  ;;  %p689_p5 = scmp.lt.s32.totalorder %s406_s17, %s406_s17 }
  0x50   :  { %v89_v21 = vld [vmem:[#allocation3 + $0x38] sm:$0xff]  ;;  %v90_v23 = vld [vmem:[#allocation3 + $0x40] sm:$0xff]  ;;  %v91_v24 = vld [vmem:[#allocation3 + $0x48] sm:$0xff]  ;;  %p690_p6 = scmp.lt.s32.totalorder %s688_s19, %s684_s18 }
  0x51   :  { %v555_v22 = vpack.c.bf16 %v89_v21, %v88_v20  ;;  %v559_v25 = vpack.c.bf16 %v91_v24, %v90_v23  ;;  %v92_v26 = vld [vmem:[#allocation3 + $0x50] sm:$0xff]  ;;  %v93_v27 = vld [vmem:[#allocation3 + $0x58] sm:$0xff]  ;;  %v94_v29 = vld [vmem:[#allocation3 + $0x60] sm:$0xff] }
  0x52   :  { %112 = vperm.xlu0 %594, %v99_v12   ;;  %v563_v28 = vpack.c.bf16 %v93_v27, %v92_v26  ;;  %v95_v30 = vld [vmem:[#allocation3 + $0x68] sm:$0xff]  ;;  %v96_v32 = vld [vmem:[#allocation3 + $0x70] sm:$0xff]  ;;  %v97_v33 = vld [vmem:[#allocation3 + $0x78] sm:$0xff]  ;;  %p691_p7 = por %p690_p6, %p689_p5 }
  0x53   :  { %122 = vperm.xlu1 %595, %v101_v13   ;;  %v567_v31 = vpack.c.bf16 %v95_v30, %v94_v29  ;;  %v571_v34 = vpack.c.bf16 %v97_v33, %v96_v32  ;;  %v75_v35 = vld [vmem:[#allocation6] sm:$0xff]  ;;  %v76_v36 = vld [vmem:[#allocation6 + $0x8] sm:$0xff]  ;;  %v77_v37 = vld [vmem:[#allocation6 + $0x10] sm:$0xff] }
  0x54   :  { %v78_v38 = vld [vmem:[#allocation6 + $0x18] sm:$0xff]  ;;  %v79_v39 = vld [vmem:[#allocation6 + $0x20] sm:$0xff]  ;;  %v80_v40 = vld [vmem:[#allocation6 + $0x28] sm:$0xff]  ;;  %p692_p8 = pnand %p691_p7, %p685_p4 }
  0x55   :  { %v81_v41 = vld [vmem:[#allocation6 + $0x30] sm:$0x3] }
  0x56   :  { %549 = vmatpush3.bf16.xpose.msk.msra.mxu0 %vm827_vm2, %v547_v9  ;;  %127 = vperm.xlu0 %594, %v102_v16  }
  0x57   :  { %550 = vmatprep.subr.bf16.mxu0 %v720_v0  ;;  %132 = vperm.xlu1 %595, %v103_v17  }
  0x5a   :  { %137 = vperm.xlu0 %594, %v104_v19  }
  0x5e   :  { %553 = vmatpush3.bf16.xpose.msk.msra.mxu0 %vm827_vm2, %v551_v18  ;;  %v317_v18 = vld [vmem:[#allocation9] sm:$0x1] }
  0x5f   :  { %554 = vmatprep.subr.bf16.mxu0 %v720_v0 }
  0x66   :  { %557 = vmatpush3.bf16.xpose.msk.msra.mxu0 %vm827_vm2, %v555_v22 }
  0x67   :  { %558 = vmatprep.subr.bf16.mxu0 %v720_v0 }
  0x6e   :  { %561 = vmatpush3.bf16.xpose.msk.msra.mxu0 %vm827_vm2, %v559_v25 }
  0x6f   :  { %562 = vmatprep.subr.bf16.mxu0 %v720_v0 }
  0x76   :  { %565 = vmatpush3.bf16.xpose.msk.msra.mxu0 %vm827_vm2, %v563_v28 }
  0x77   :  { %566 = vmatprep.subr.bf16.mxu0 %v720_v0 }
  0x7e   :  { %569 = vmatpush3.bf16.xpose.msk.msra.mxu0 %vm827_vm2, %v567_v31 }
  0x7f   :  { %570 = vmatprep.subr.bf16.mxu0 %v720_v0 }
  0x86   :  { %573 = vmatpush3.bf16.xpose.msk.msra.mxu0 %vm827_vm2, %v571_v34 }
  0x8d   :  { %505 = vmatmul.mubr.msk.f32.vlgmr.msra.gmra.mrb[0].mxu0 %vm140_vm1, %v75_v35 }
  0x8e   :  { %507 = vmatprep.mubr.msk.f32.mxu0 %vm721_vm0, %v722_v1 }
  0x91   :  { %508 = vmatmul.mubr.msk.f32.gmra.mrb[2].mxu0 %vm140_vm1, %v76_v36 }
  0x92   :  { %510 = vmatprep.mubr.msk.f32.mxu0 %vm721_vm0, %v722_v1 }
  0x95   :  { %511 = vmatmul.mubr.msk.f32.gmra.mrb[4].mxu0 %vm140_vm1, %v77_v37 }
  0x96   :  { %513 = vmatprep.mubr.msk.f32.mxu0 %vm721_vm0, %v722_v1 }
  0x99   :  { %514 = vmatmul.mubr.msk.f32.gmra.mrb[6].mxu0 %vm140_vm1, %v78_v38 }
  0x9a   :  { %516 = vmatprep.mubr.msk.f32.mxu0 %vm721_vm0, %v722_v1 }
  0x9d   :  { %517 = vmatmul.mubr.msk.f32.gmra.mrb[8].mxu0 %vm140_vm1, %v79_v39 }
  0x9e   :  { %519 = vmatprep.mubr.msk.f32.mxu0 %vm721_vm0, %v722_v1 }
  0xa1   :  { %520 = vmatmul.mubr.msk.f32.gmra.mrb[10].mxu0 %vm140_vm1, %v80_v40 }
  0xa2   :  { %522 = vmatprep.mubr.msk.f32.mxu0 %vm721_vm0, %v722_v1 }
  0xa5   :  { %523 = vmatmul.mubr.msk.f32.gmra.mrb[12].mxu0 %vm140_vm1, %v81_v41 }
  0xcd   :  { %v108_v42 = vpop.permute.xlu0 %107 }
  0xce   :  { %v118_v50 = vpop.permute.xlu1 %117 }
  0xd1   :  { %v113_v46 = vpop.permute.xlu0 %112 }
  0xd2   :  { %v123_v57 = vpop.permute.xlu1 %122 }
  0xd5   :  { %v128_v4 = vpop.permute.xlu0 %127 }
  0xd6   :  { %v133_v6 = vpop.permute.xlu1 %132 }
  0xd9   :  { %v138_v12 = vpop.permute.xlu0 %137 }
 0x160   :  { %v276_v43 = vpop.f32.mrb[0].mxu0 }
 0x161   :  { %v506_v44 = vpop.f32.mrb[1].mxu0  ;;  %v277_v45 = vadd.f32 %v276_v43, %v108_v42 }
 0x163   :  { %v310_v51 = vmax.f32 %v277_v45, 0.0 }
 0x164   :  { %v281_v47 = vpop.f32.mrb[2].mxu0 }
 0x165   :  { %v282_v48 = vadd.f32 %v281_v47, %v113_v46  ;;  %v509_v49 = vpop.f32.mrb[3].mxu0 }
 0x167   :  { %v311_v52 = vmax.f32 %v282_v48, 0.0 }
 0x168   :  { %v286_v53 = vpop.f32.mrb[4].mxu0 }
 0x169   :  { %v512_v54 = vpop.f32.mrb[5].mxu0  ;;  %v575_v55 = vpack.c.bf16 %v311_v52, %v310_v51  ;;  %v287_v56 = vadd.f32 %v286_v53, %v118_v50 }
 0x16b   :  { %576 = vmatpush3.bf16.msra.mxu1 %v575_v55  ;;  %v312_v61 = vmax.f32 %v287_v56, 0.0 }
 0x16c   :  { %v291_v58 = vpop.f32.mrb[6].mxu0  ;;  %577 = vmatprep.subr.bf16.mxu1 %v720_v0 }
 0x16d   :  { %v292_v59 = vadd.f32 %v291_v58, %v123_v57  ;;  %v515_v60 = vpop.f32.mrb[7].mxu0 }
 0x16f   :  { %v313_v62 = vmax.f32 %v292_v59, 0.0 }
 0x170   :  { %v296_v63 = vpop.f32.mrb[8].mxu0 }
 0x171   :  { %v578_v2 = vpack.c.bf16 %v313_v62, %v312_v61  ;;  %v518_v3 = vpop.f32.mrb[9].mxu0  ;;  %v297_v5 = vadd.f32 %v296_v63, %v128_v4 }
 0x173   :  { %579 = vmatpush3.bf16.msra.mxu1 %v578_v2  ;;  %v314_v10 = vmax.f32 %v297_v5, 0.0 }
 0x174   :  { %v301_v7 = vpop.f32.mrb[10].mxu0  ;;  %580 = vmatprep.subr.bf16.mxu1 %v720_v0  ;;  %v319_v0 = vstv %s895_s4 }
 0x175   :  { %v302_v8 = vadd.f32 %v301_v7, %v133_v6  ;;  %v521_v9 = vpop.f32.mrb[11].mxu0 }
 0x177   :  { %v315_v11 = vmax.f32 %v302_v8, 0.0 }
 0x178   :  { %v306_v13 = vpop.f32.mrb[12].mxu0 }
 0x179   :  { %v581_v14 = vpack.c.bf16 %v315_v11, %v314_v10  ;;  %v307_v15 = vadd.f32 %v306_v13, %v138_v12  ;;  %v524_v16 = vpop.f32.mrb[13].mxu0 }
 0x17b   :  { %582 = vmatpush3.bf16.msra.mxu1 %v581_v14  ;;  %v316_v17 = vmax.f32 %v307_v15, 0.0 }
 0x17c   :  { %537 = vmatprep.subr.mxu1 %v722_v1 }
 0x17f   :  { %538 = vmatpush3.msk.msra.mxu1 %vm324_vm3, %v316_v17 }
 0x180   :  { %540 = vmatmul.mubr.msk.f32.vlgmr.msra.gmra.mrb[0].mxu1 %vm320_vm4, %v317_v18 }
 0x253   :  { %v394_v19 = vpop.f32.mrb[0].mxu1 }
 0x254   :  { %v395_v20 = vadd.f32 %v394_v19, %v319_v0  ;;  %v541_v21 = vpop.f32.mrb[1].mxu1 }
 0x256   :  { %398 = vst [vmem:[#allocation11] sm:$0x1] %v395_v20 }
 0x257   :  { %695 = shalt.err (!%p692_p8)
}
 0x258   :  { %s696_s23 = scalar_lea.hbm %s896_s5, 16 }
 0x259   :  { %p697_p9 = scmp.ne.s32.totalorder %s896_s5, %s696_s23  ;;  %p700_p10 = scmp.lt.u32.totalorder %s696_s23, %s896_s5 }
 0x25b   :  { %p702_p11 = pnand %p700_p10, %p697_p9 }
 0x25d   :  { %705 = shalt.err (!%p702_p11)
}
 0x25e   :  { %408 = dma.vmem_to_hbm [thread:$0]  %s406_s17, 16, %s896_s5, [#allocation5]  }
 0x25f   :  { %712 = dma.done.wait [#allocation5], 16  }
 0x260   :  { %713 = vsyncadd [#allocation5], 4294967280 }
 0x261   :  { %412 = vsyncpa [#allocation4], 1 }
 0x262   :  { %413 = vsyncpa [#allocation7], 1 }
 0x263   :  { %414 = vsyncpa [#allocation10], 1 }
 0x264   :  { %415 = vsyncpa [#allocation5], 1 }

</bundles_post_ra>
